<compile_context>
chip_gen: v5e
topology: v5e:2x2
jax: 0.10.0
libtpu: 0.0.40
codegen_flags: <defaults>
</compile_context>

<pallas_src>
import functools

import jax
import jax.numpy as jnp
from jax import lax
from jax.experimental import pallas as pl
from jax.experimental.pallas import tpu as pltpu


def _gate_kernel(m_ref, w_ref, b_ref, o_ref, *, topk: int):
    # m_ref: (TB, n_memory, fea_dim)  VMEM, native dtype
    # w_ref: (1, fea_dim)             VMEM, f32 (Linear weight, lane-dense)
    # b_ref: (1, 1)                   SMEM, f32 scalar bias
    # o_ref: (TB, fea_dim)            VMEM
    m = m_ref[...]                                      # native dtype
    tb, n_memory, fea_dim = m.shape

    # bf16 VALUs exist on v6e/v7x: keep broadcast products in bf16 when the
    # input is bf16, accumulate reductions in f32.  f32 inputs stay f32
    # (also the right choice on v5e, which has no bf16 VALU).
    compute_dtype = m.dtype if m.dtype == jnp.bfloat16 else jnp.float32
    w = w_ref[...].astype(compute_dtype)                # (1, fea_dim)
    bias = b_ref[0, 0]

    # ---- Linear(fea_dim -> 1): broadcast-multiply + lane reduction over
    #      fea_dim.  Result (TB, n_memory): memory slots on lanes.  Kept on
    #      VPU/XLU on purpose (degenerate N=1 matmul would waste the MXU).
    logits = jnp.sum(m * w[:, None, :], axis=-1, dtype=jnp.float32) + bias   # (TB, n)

    # ---- unnormalized softmax: exp is monotone, so top-k on e selects the
    #      same slots as top-k on softmax(logits).  Normalization deferred.
    mx = jnp.max(logits, axis=-1, keepdims=True)                  # (TB, 1)
    e = jnp.exp(logits - mx)                                      # (TB, n), in (0, 1]
    denom = jnp.sum(e, axis=-1, keepdims=True)                    # (TB, 1)

    # ---- iterative top-k on the small (TB, n_memory) tile only; builds a
    #      sparse tensor of the selected slots' UNNORMALIZED weights.
    idx = lax.broadcasted_iota(jnp.int32, (tb, n_memory), 1)
    remaining = e
    sel_e = jnp.zeros_like(e)
    for _ in range(topk):
        cur_max = jnp.max(remaining, axis=-1, keepdims=True)      # (TB, 1)
        is_max = remaining >= cur_max
        # first occurrence (matches torch.topk / lax.top_k tie ordering)
        sel_idx = jnp.min(jnp.where(is_max, idx, n_memory),
                          axis=-1, keepdims=True)                 # (TB, 1)
        sel_mask = idx == sel_idx                                 # (TB, n)
        sel_e = jnp.where(sel_mask, remaining, sel_e)
        remaining = jnp.where(sel_mask, jnp.float32(-1.0), remaining)  # e >= 0, finite sentinel

    # ---- single fused weighted accumulation over the selected slots, then
    #      one exact per-row normalization (deferred softmax denominator):
    #      out[b, f] = (sum_n sel_e[b, n] * m[b, n, f]) / denom[b]
    acc = jnp.sum(sel_e.astype(compute_dtype)[:, :, None] * m, axis=1,
                  dtype=jnp.float32)                              # (TB, fea) f32
    o_ref[...] = (acc / denom).astype(o_ref.dtype)


def _round_up(x, m):
    return ((x + m - 1) // m) * m


def _pick_batch_tile(B, n_memory, fea_dim, dtype_bytes, vmem_budget_bytes):
    # Per-row resident estimate:
    #   double-buffered native-dtype input block            : 2 * n*f*dsize
    #   two f32 (n, f) products (logits pass + accum pass)   : 8 * n*f
    #   a handful of f32 (n,) gating vectors                 : 8 * n * 4
    #   double-buffered output row + f32 accumulator row     : f*(2*dsize + 4)
    per_row = n_memory * fea_dim * (2 * dtype_bytes + 8)
    per_row += 8 * n_memory * 4 + fea_dim * (2 * dtype_bytes + 4)
    tb = (vmem_budget_bytes // max(per_row, 1)) // 8 * 8
    tb = max(8, min(tb, 512))              # sublane floor; cap per-step latency
    tb = min(tb, _round_up(B, 8))          # never larger than the (rounded) batch
    if B > 8:
        # keep >= 2 grid steps so the "parallel" axis can split across v7x's
        # two TensorCores (and pipelining has something to overlap).
        tb = min(tb, max(8, _round_up(pl.cdiv(B, 2), 8)))
    return tb


def gate_network_forward(m_items, w, b, topk, vmem_budget_bytes=20 * 1024 * 1024):
    """m_items: (B, n_memory, fea_dim), w: (fea_dim, 1), b: scalar -> (B, 1, fea_dim)."""
    B, n_memory, fea_dim = m_items.shape
    assert topk <= n_memory, "topk must be <= n_memory"
    dsize = jnp.dtype(m_items.dtype).itemsize

    tb = _pick_batch_tile(B, n_memory, fea_dim, dsize, vmem_budget_bytes)
    grid = pl.cdiv(B, tb)                  # ragged last block; no jnp.pad copy of m_items

    w_row = jnp.reshape(w, (1, fea_dim)).astype(jnp.float32)     # lane-dense weight
    b2d = jnp.reshape(b, (1, 1)).astype(jnp.float32)

    kernel = functools.partial(_gate_kernel, topk=topk)
    out = pl.pallas_call(
        kernel,
        out_shape=jax.ShapeDtypeStruct((B, fea_dim), m_items.dtype),
        grid_spec=pltpu.PrefetchScalarGridSpec(
            num_scalar_prefetch=0,
            grid=(grid,),
            in_specs=[
                pl.BlockSpec((tb, n_memory, fea_dim), lambda bi: (bi, 0, 0)),
                pl.BlockSpec((1, fea_dim), lambda bi: (0, 0)),
                pl.BlockSpec(memory_space=pltpu.MemorySpace.SMEM),
            ],
            out_specs=pl.BlockSpec((tb, fea_dim), lambda bi: (bi, 0)),
        ),
        compiler_params=pltpu.CompilerParams(
            dimension_semantics=("parallel",),
            # Above the 16 MiB (v5e) / 32 MiB (v6e, v7x) scoped defaults and
            # safely under v7x's 64 MiB physical VMEM.
            vmem_limit_bytes=48 * 1024 * 1024,
        ),
    )(m_items, w_row, b2d)

    return out[:, None, :]                                        # (B, 1, fea_dim)


def gate_network_reference(m_items, w, b, topk):
    logits = jnp.einsum('bnc,co->bno', m_items, w) + b            # (B, n, 1)
    weight = jax.nn.softmax(logits, axis=1)
    top_w, top_i = lax.top_k(weight[..., 0], topk)                # (B, k)
    items = jnp.take_along_axis(m_items, top_i[..., None], axis=1)
    return jnp.einsum('bkc,bk->bc', items, top_w)[:, None, :]


if __name__ == "__main__":
    configs = [
        # (B, n_memory, fea_dim, topk)
        (16, 16, 32, 4),   # 2 grid steps (megacore-friendly batch blocking)
        (3, 16, 32, 2),    # single ragged block (B < tb), no pad copy
        (70, 16, 32, 3),   # multi-step grid with a ragged final block
    ]
    key = jax.random.PRNGKey(0)
    for (B, n_memory, fea_dim, topk) in configs:
        key, k_m, k_q, k_w, k_b = jax.random.split(key, 5)
        m_items = jax.random.normal(k_m, (B, n_memory, fea_dim), dtype=jnp.float32)
        query = jax.random.normal(k_q, (B, n_memory, fea_dim), dtype=jnp.float32)  # unused by forward
        # Deterministic "Linear(fea_dim, 1)" parameters.
        w = jax.random.normal(k_w, (fea_dim, 1), dtype=jnp.float32) * 0.1
        b = jax.random.normal(k_b, (), dtype=jnp.float32) * 0.1

        out = gate_network_forward(m_items, w, b, topk)
        out = jax.block_until_ready(out)

        ref = gate_network_reference(m_items, w, b, topk)
        assert out.shape == (B, 1, fea_dim), out.shape
        assert jnp.allclose(out, ref, atol=1e-5, rtol=1e-5), "mismatch vs reference"

    print("KERNEL_OK")
</pallas_src>

<mosaic_0001>
module attributes {stable_mosaic.version = 11 : i64} {
  func.func @_gate_kernel(%arg0: i32, %arg1: memref<8x16x32xf32, #tpu.memory_space<vmem>>, %arg2: memref<1x32xf32, #tpu.memory_space<vmem>>, %arg3: memref<1x1xf32, #tpu.memory_space<smem>>, %arg4: memref<8x32xf32, #tpu.memory_space<vmem>>) attributes {dimension_semantics = [#tpu.dimension_semantics<parallel>], iteration_bounds = array<i64: 2>, scalar_prefetch = 0 : i64, scratch_operands = 0 : i64, tpu.core_type = #tpu.core_type<tc>, window_params = [{transform_indices = @transform_0, window_bounds = array<i64: 8, 16, 32>}, {pipeline_mode = #tpu.pipeline_mode<synchronous>, transform_indices = @transform_1, window_bounds = array<i64: 1, 32>}, {transform_indices = @transform_2, window_bounds = array<i64: 1, 1>}, {transform_indices = @transform_3, window_bounds = array<i64: 8, 32>}]} {
    %c0 = arith.constant 0 : index
    %c0_0 = arith.constant 0 : index
    %c0_1 = arith.constant 0 : index
    %0 = vector.load %arg1[%c0, %c0_0, %c0_1] : memref<8x16x32xf32, #tpu.memory_space<vmem>>, vector<8x16x32xf32>
    %c0_2 = arith.constant 0 : index
    %c0_3 = arith.constant 0 : index
    %1 = vector.load %arg2[%c0_2, %c0_3] : memref<1x32xf32, #tpu.memory_space<vmem>>, vector<1x32xf32>
    %c0_4 = arith.constant 0 : index
    %c0_5 = arith.constant 0 : index
    %2 = memref.load %arg3[%c0_4, %c0_5] : memref<1x1xf32, #tpu.memory_space<smem>>
    %3 = vector.shape_cast %1 : vector<1x32xf32> to vector<1x1x32xf32>
    %4 = vector.broadcast %3 : vector<1x1x32xf32> to vector<8x16x32xf32>
    %5 = arith.mulf %0, %4 : vector<8x16x32xf32>
    %cst = arith.constant dense<0.000000e+00> : vector<8x16xf32>
    %6 = vector.multi_reduction <add>, %5, %cst [2] : vector<8x16x32xf32> to vector<8x16xf32>
    %7 = vector.broadcast %2 : f32 to vector<8x16xf32>
    %8 = arith.addf %6, %7 : vector<8x16xf32>
    %cst_6 = arith.constant dense<0xFF800000> : vector<8xf32>
    %9 = vector.multi_reduction <maximumf>, %8, %cst_6 [1] : vector<8x16xf32> to vector<8xf32>
    %10 = vector.shape_cast %9 : vector<8xf32> to vector<8x1xf32>
    %11 = vector.broadcast %10 : vector<8x1xf32> to vector<8x16xf32>
    %12 = arith.subf %8, %11 : vector<8x16xf32>
    %13 = math.exp %12 : vector<8x16xf32>
    %cst_7 = arith.constant dense<0.000000e+00> : vector<8xf32>
    %14 = vector.multi_reduction <add>, %13, %cst_7 [1] : vector<8x16xf32> to vector<8xf32>
    %15 = vector.shape_cast %14 : vector<8xf32> to vector<8x1xf32>
    %16 = tpu.iota {dimensions = array<i32: 1>} : vector<8x16xi32>
    %cst_8 = arith.constant 0.000000e+00 : f32
    %17 = vector.broadcast %cst_8 : f32 to vector<8x16xf32>
    %cst_9 = arith.constant dense<0xFF800000> : vector<8xf32>
    %18 = vector.multi_reduction <maximumf>, %13, %cst_9 [1] : vector<8x16xf32> to vector<8xf32>
    %19 = vector.shape_cast %18 : vector<8xf32> to vector<8x1xf32>
    %20 = vector.broadcast %19 : vector<8x1xf32> to vector<8x16xf32>
    %21 = arith.cmpf oge, %13, %20 : vector<8x16xf32>
    %c16_i32 = arith.constant 16 : i32
    %22 = vector.broadcast %c16_i32 : i32 to vector<8x16xi32>
    %23 = arith.select %21, %16, %22 : vector<8x16xi1>, vector<8x16xi32>
    %cst_10 = arith.constant dense<2147483647> : vector<8xi32>
    %24 = vector.multi_reduction <minsi>, %23, %cst_10 [1] : vector<8x16xi32> to vector<8xi32>
    %25 = vector.shape_cast %24 : vector<8xi32> to vector<8x1xi32>
    %26 = vector.broadcast %25 : vector<8x1xi32> to vector<8x16xi32>
    %27 = arith.cmpi eq, %16, %26 : vector<8x16xi32>
    %28 = arith.select %27, %13, %17 : vector<8x16xi1>, vector<8x16xf32>
    %cst_11 = arith.constant -1.000000e+00 : f32
    %29 = vector.broadcast %cst_11 : f32 to vector<8x16xf32>
    %30 = arith.select %27, %29, %13 : vector<8x16xi1>, vector<8x16xf32>
    %cst_12 = arith.constant dense<0xFF800000> : vector<8xf32>
    %31 = vector.multi_reduction <maximumf>, %30, %cst_12 [1] : vector<8x16xf32> to vector<8xf32>
    %32 = vector.shape_cast %31 : vector<8xf32> to vector<8x1xf32>
    %33 = vector.broadcast %32 : vector<8x1xf32> to vector<8x16xf32>
    %34 = arith.cmpf oge, %30, %33 : vector<8x16xf32>
    %c16_i32_13 = arith.constant 16 : i32
    %35 = vector.broadcast %c16_i32_13 : i32 to vector<8x16xi32>
    %36 = arith.select %34, %16, %35 : vector<8x16xi1>, vector<8x16xi32>
    %cst_14 = arith.constant dense<2147483647> : vector<8xi32>
    %37 = vector.multi_reduction <minsi>, %36, %cst_14 [1] : vector<8x16xi32> to vector<8xi32>
    %38 = vector.shape_cast %37 : vector<8xi32> to vector<8x1xi32>
    %39 = vector.broadcast %38 : vector<8x1xi32> to vector<8x16xi32>
    %40 = arith.cmpi eq, %16, %39 : vector<8x16xi32>
    %41 = arith.select %40, %30, %28 : vector<8x16xi1>, vector<8x16xf32>
    %cst_15 = arith.constant -1.000000e+00 : f32
    %42 = vector.broadcast %cst_15 : f32 to vector<8x16xf32>
    %43 = arith.select %40, %42, %30 : vector<8x16xi1>, vector<8x16xf32>
    %cst_16 = arith.constant dense<0xFF800000> : vector<8xf32>
    %44 = vector.multi_reduction <maximumf>, %43, %cst_16 [1] : vector<8x16xf32> to vector<8xf32>
    %45 = vector.shape_cast %44 : vector<8xf32> to vector<8x1xf32>
    %46 = vector.broadcast %45 : vector<8x1xf32> to vector<8x16xf32>
    %47 = arith.cmpf oge, %43, %46 : vector<8x16xf32>
    %c16_i32_17 = arith.constant 16 : i32
    %48 = vector.broadcast %c16_i32_17 : i32 to vector<8x16xi32>
    %49 = arith.select %47, %16, %48 : vector<8x16xi1>, vector<8x16xi32>
    %cst_18 = arith.constant dense<2147483647> : vector<8xi32>
    %50 = vector.multi_reduction <minsi>, %49, %cst_18 [1] : vector<8x16xi32> to vector<8xi32>
    %51 = vector.shape_cast %50 : vector<8xi32> to vector<8x1xi32>
    %52 = vector.broadcast %51 : vector<8x1xi32> to vector<8x16xi32>
    %53 = arith.cmpi eq, %16, %52 : vector<8x16xi32>
    %54 = arith.select %53, %43, %41 : vector<8x16xi1>, vector<8x16xf32>
    %cst_19 = arith.constant -1.000000e+00 : f32
    %55 = vector.broadcast %cst_19 : f32 to vector<8x16xf32>
    %56 = arith.select %53, %55, %43 : vector<8x16xi1>, vector<8x16xf32>
    %cst_20 = arith.constant dense<0xFF800000> : vector<8xf32>
    %57 = vector.multi_reduction <maximumf>, %56, %cst_20 [1] : vector<8x16xf32> to vector<8xf32>
    %58 = vector.shape_cast %57 : vector<8xf32> to vector<8x1xf32>
    %59 = vector.broadcast %58 : vector<8x1xf32> to vector<8x16xf32>
    %60 = arith.cmpf oge, %56, %59 : vector<8x16xf32>
    %c16_i32_21 = arith.constant 16 : i32
    %61 = vector.broadcast %c16_i32_21 : i32 to vector<8x16xi32>
    %62 = arith.select %60, %16, %61 : vector<8x16xi1>, vector<8x16xi32>
    %cst_22 = arith.constant dense<2147483647> : vector<8xi32>
    %63 = vector.multi_reduction <minsi>, %62, %cst_22 [1] : vector<8x16xi32> to vector<8xi32>
    %64 = vector.shape_cast %63 : vector<8xi32> to vector<8x1xi32>
    %65 = vector.broadcast %64 : vector<8x1xi32> to vector<8x16xi32>
    %66 = arith.cmpi eq, %16, %65 : vector<8x16xi32>
    %67 = arith.select %66, %56, %54 : vector<8x16xi1>, vector<8x16xf32>
    %68 = vector.shape_cast %67 : vector<8x16xf32> to vector<8x16x1xf32>
    %69 = vector.broadcast %68 : vector<8x16x1xf32> to vector<8x16x32xf32>
    %70 = arith.mulf %69, %0 : vector<8x16x32xf32>
    %cst_23 = arith.constant dense<0.000000e+00> : vector<8x32xf32>
    %71 = vector.multi_reduction <add>, %70, %cst_23 [1] : vector<8x16x32xf32> to vector<8x32xf32>
    %72 = vector.broadcast %15 : vector<8x1xf32> to vector<8x32xf32>
    %73 = arith.divf %71, %72 : vector<8x32xf32>
    %c0_24 = arith.constant 0 : index
    %c0_25 = arith.constant 0 : index
    %74 = vector.load %arg4[%c0_24, %c0_25] : memref<8x32xf32, #tpu.memory_space<vmem>>, vector<8x32xf32>
    tpu.vector_store %arg4[%c0_24, %c0_25], %73 {strides = array<i32>} : memref<8x32xf32, #tpu.memory_space<vmem>>, vector<8x32xf32>,
    return
  }
  func.func @transform_0(%arg0: i32) -> (i32, i32, i32) {
    %c0_i32 = arith.constant 0 : i32
    %c0_i32_0 = arith.constant 0 : i32
    %c0_i32_1 = arith.constant 0 : i32
    return %arg0, %c0_i32, %c0_i32_0 : i32, i32, i32
  }
  func.func @transform_1(%arg0: i32) -> (i32, i32) {
    %c0_i32 = arith.constant 0 : i32
    %c0_i32_0 = arith.constant 0 : i32
    %c0_i32_1 = arith.constant 0 : i32
    return %c0_i32, %c0_i32_0 : i32, i32
  }
  func.func @transform_2(%arg0: i32) -> (i32, i32) {
    %c0_i32 = arith.constant 0 : i32
    %c0_i32_0 = arith.constant 0 : i32
    %c0_i32_1 = arith.constant 0 : i32
    return %c0_i32, %c0_i32_0 : i32, i32
  }
  func.func @transform_3(%arg0: i32) -> (i32, i32) {
    %c0_i32 = arith.constant 0 : i32
    %c0_i32_0 = arith.constant 0 : i32
    return %arg0, %c0_i32 : i32, i32
  }
}

</mosaic_0001>

<bundles_post_ra>
// kernel: tpu_custom_call.1
= control target key start
LH: loop header
LB: loop body
LE: loop exit
PB: predicated region body
PF: predicated region fallthrough
CT: control target
= control target key end

     0   :  { %s2233_s0 = inlined_call_operand.hbm [shape: f32[16,16,32], index: 0, kind: input, shape index: {}]   ;;  %s2234_s1 = inlined_call_operand.vmem [shape: f32[1,32], index: 1, kind: input, shape index: {}]   ;;  %s2235_s2 = inlined_call_operand.<no memory space> [shape: f32[1,1], index: 2, kind: input, shape index: {}]   ;;  %s2236_s3 = inlined_call_operand.hbm [shape: f32[16,32], index: 3, kind: output, shape index: {}]  }
   0x1   :  { %8 = sst [smem:[#allocation2]] %s2235_s2 }
   0x2   :  { %9 = vsyncpa [#allocation4], 0 }
   0x3   :  { %11 = vsyncpa [#allocation4 + $0x1], 0 }
   0x4   :  { %12 = vsyncpa [#allocation5], 0 }
   0x5   :  { %14 = vsyncpa [#allocation5 + $0x1], 0  ;;  %s1463_s14 = smov 0   ;;  %s1465_s15 = smov 0  }
   0x6   :  { %s1467_s16 = smov 0   ;;  %s1469_s17 = smov 0  }
   0x7 LB: > { %s1484_s2 = sadd.s32 4294967295, %s1435_s17   ;;  %s1191_s18 = sadd.s32 4294967294, %s1435_s17   ;;  %s1435_s17 = sphi %s1469_s17, %s2284_s17   ;;  %s1431_s16 = sphi %s1467_s16, %s2283_s16   ;;  %s1427_s15 = sphi %s1465_s15, %s2282_s15   ;;  %s1423_s14 = sphi %s1463_s14, %s2281_s14  }
   0x8   : > { %s1488_s19 = sadd.s32 1, %s1435_s17   ;;  %s27_s20 = sadd.s32 1, %s1431_s16 }
   0x9   : > { %s24_s21 = ssub.s32 %s1435_s17, %s1488_s19  ;;  %p34_p0 = scmp.ne.s32.totalorder %s1431_s16, %s1427_s15 }
   0xa   : > { %p25_p1 = scmp.eq.s32.totalorder %s24_s21, 0  ;;  %p35_p2 = scmp.eq.s32.totalorder %s1435_s17, 0 }
   0xb   : > { %p40_p3 = scmp.ne.s32.totalorder %s1427_s15, %s1423_s14  ;;  %p41_p4 = scmp.eq.s32.totalorder %s1484_s2, 0 }
   0xc   : > { %s1500_s22 = scalar_select %p25_p1, %s1431_s16, %s27_s20  }
   0xd   : > { %p1502_p5 = por %p35_p2, %p34_p0  ;;  %p1506_p6 = por %p41_p4, %p40_p3 }
   0xe   : > { %p106_p7 = scmp.eq.s32.totalorder %s1484_s2, 1  ;;  %p112_p8 = scmp.eq.s32.totalorder %s1191_s18, 1 }
   0xf   : > { %p1219_p10 = scmp.lt.s32.totalorder %s1435_s17, 2  ;;  %s138_s27 = sand.u32 1, %s1431_s16  }
  0x10   : > { %p1513_p11 = por %p106_p7, %p34_p0  ;;  %p1517_p12 = por %p112_p8, %p40_p3 }
  0x11   : > { %s1206_s28 = sshll.u32 %s1435_s17, 7  ;;  %s1194_s29 = sshll.u32 %s138_s27, 7 }
  0x12   : > { %s148_s5 = scalar_lea.hbm %s2233_s0, %s1206_s28  ;;  %s142_s7 = scalar_lea.vmem [#allocation3], %s1194_s29 }
  0x13   : > { %s149_s6 = sshll.u32 %s148_s5, 4  ;;  %s151_s8 = sshll.u32 %s142_s7, 4  ;;  %s150_s6 = int_to_ptr.hbm [resolvable:$true] %s149_s6  ;;  %s152_s8 = int_to_ptr.vmem [resolvable:$true] %s151_s8 }
  0x14   : > { %p1528_p13 = pnand %p1219_p10, %p1502_p5  ;;  %p1198_p0 = scmp.ge.s32.totalorder %s1435_s17, 1 }
  0x15   : > { %p159_p1 = scmp.lt.s32.totalorder %s1435_s17, 3  ;;  %s139_s10 = scalar_lea.sflag [#allocation4], %s138_s27 }
  0x16   : > { %s1339_s11 = sshra.s32 %s150_s6, 4  ;;  %p1343_p3 = pneg %p1528_p13  ;;  %s1340_s11 = int_to_ptr.hbm [resolvable:$true] %s1339_s11 }
  0x17   : > { %s1341_s12 = scalar_lea.hbm %s1340_s11, 128  ;;  %s1346_s20 = scalar_lea.hbm %s2233_s0, 256 }
  0x18   : > { %p1342_p2 = scmp.ne.s32.totalorder %s1340_s11, %s1341_s12  ;;  %p1347_p5 = scmp.lt.s32.totalorder %s1340_s11, %s2233_s0 }
  0x19   : > { %p1348_p8 = scmp.lt.s32.totalorder %s1346_s20, %s1341_s12 }
  0x1a   : > { %p1344_p4 = pnand %p1343_p3, %p1342_p2 }
  0x1b   : > { %p1349_p10 = por %p1348_p8, %p1347_p5 }
  0x1c   : > { %p1345_p7 = pneg %p1344_p4 }
  0x1e   : > { %p1350_p9 = pnand %p1349_p10, %p1345_p7 }
  0x20   : > { %1353 = shalt.err (!%p1350_p9)
}
  0x21   : > { %s1437_s27 = smov 128   ;;  %s1438_s28 = smov 8  }
  0x22   : > { %1214 = dma.hbm_to_vmem [thread:$0]  (!%p1528_p13), %s150_s6, 2048, %s152_s8, %s139_s10, %s1437_s27, %s1437_s27, %s1438_s28  }
  0x23   : > { %p160_p2 = pnand %p1198_p0, %p159_p1 }
  0x24   : > { %s1549_s29 = sand.u32 (!%p160_p2), 1, %s1427_s15  }
  0x25   : > { %163 = sbr.rel (%p160_p2) target bundleno = 2326 (0x916), region = 32  ;;  %s1199_s30 = sshll.u32 (!%p160_p2), %s1549_s29, 7 }
  0x26   : > { %s166_s4 = scalar_lea.sflag (!%p160_p2), [#allocation4], %s1549_s29  ;;  %s1553_s5 = scalar_lea.vmem (!%p160_p2), [#allocation3], %s1199_s30 }
  0x2a   : > { %1414 = dma.done.wait (%p1506_p6), %s166_s4, 2048  }
  0x2b   : > { %1416 = vsyncadd (%p1506_p6), %s166_s4, 4294965248  ;;  %v198_v0 = vld [vmem:[%s1553_s5 + $0x20] sm:$0xff]  ;;  %vm231_vm0 = vcmask 261120   ;;  %v196_v2 = vld [vmem:[%s1553_s5 + $0x10] sm:$0xff]  ;;  %s211_s24 = sld [smem:[#allocation2]]  ;;  %v313_v58 = vlaneseq  ;;  %vm318_vm1 = vcmask 130112  }
  0x2c   : > { %v1274_v1 = vld [vmem:[%s2234_s1] ss:$0 sm:$0xff]  ;;  %v199_v7 = vld [vmem:[%s1553_s5 + $0x28] sm:$0xff]  ;;  %v197_v8 = vld [vmem:[%s1553_s5 + $0x18] sm:$0xff]  ;;  %vm341_vm2 = vcmask 1041409   ;;  %vm343_vm3 = vcmask 1042434  }
  0x2d   : > { %v194_v3 = vld [vmem:[%s1553_s5] sm:$0xff]  ;;  %v219_v4 = vmul.f32 %v1274_v1, %v198_v0  ;;  %v217_v5 = vmul.f32 %v1274_v1, %v196_v2  ;;  %v195_v12 = vld [vmem:[%s1553_s5 + $0x8] sm:$0xff]  ;;  %v220_v13 = vmul.f32 %v1274_v1, %v199_v7  ;;  %v218_v14 = vmul.f32 %v1274_v1, %v197_v8  ;;  %v201_v19 = vld [vmem:[%s1553_s5 + $0x38] sm:$0xff]  ;;  %s1200_s8 = sshll.u32 %s1549_s29, 3  ;;  %s1202_s9 = sshll.u32 %s1484_s2, 3 }
  0x2e   : > { %v215_v6 = vmul.f32 %v1274_v1, %v194_v3  ;;  %v216_v15 = vmul.f32 %v1274_v1, %v195_v12  ;;  %v202_v20 = vld [vmem:[%s1553_s5 + $0x40] sm:$0xff]  ;;  %v200_v21 = vld [vmem:[%s1553_s5 + $0x30] sm:$0xff]  ;;  %v222_v22 = vmul.f32 %v1274_v1, %v201_v19  ;;  %v205_v29 = vld [vmem:[%s1553_s5 + $0x58] sm:$0xff]  ;;  %v1595_v59 = vand.u32 127, %v313_v58  ;;  %s1116_s12 = scalar_lea.hbm %s2236_s3, %s1202_s9  ;;  %s192_s2 = scalar_lea.vmem [#allocation6], %s1200_s8 }
  0x2f   : > { %v244_v9 = vsel %vm231_vm0, %v219_v4, 0.0  ;;  %v238_v10 = vsel %vm231_vm0, %v217_v5, 0.0  ;;  %v247_v16 = vsel %vm231_vm0, %v220_v13, 0.0  ;;  %v241_v17 = vsel %vm231_vm0, %v218_v14, 0.0  ;;  %v204_v28 = vld [vmem:[%s1553_s5 + $0x50] sm:$0xff]  ;;  %v203_v30 = vld [vmem:[%s1553_s5 + $0x48] sm:$0xff] }
  0x30   : > { %v232_v11 = vsel %vm231_vm0, %v215_v6, 0.0  ;;  %245 = vadd.xlane.f32.xlu2 %v244_v9  ;;  %239 = vadd.xlane.f32.xlu1 %v238_v10  ;;  %v235_v18 = vsel %vm231_vm0, %v216_v15, 0.0  ;;  %v223_v23 = vmul.f32 %v1274_v1, %v202_v20  ;;  %v221_v24 = vmul.f32 %v1274_v1, %v200_v21  ;;  %v207_v37 = vld [vmem:[%s1553_s5 + $0x68] sm:$0xff]  ;;  %v208_v38 = vld [vmem:[%s1553_s5 + $0x70] sm:$0xff]  ;;  %v206_v39 = vld [vmem:[%s1553_s5 + $0x60] sm:$0xff]  ;;  %s1118_s13 = sshll.u32 %s192_s2, 4  ;;  %s1119_s13 = int_to_ptr.vmem [resolvable:$true] %s1118_s13 }
  0x31   : > { %233 = vadd.xlane.f32.xlu0 %v232_v11  ;;  %v253_v25 = vsel %vm231_vm0, %v222_v22, 0.0  ;;  %v225_v31 = vmul.f32 %v1274_v1, %v204_v28  ;;  %v226_v32 = vmul.f32 %v1274_v1, %v205_v29  ;;  %v224_v33 = vmul.f32 %v1274_v1, %v203_v30  ;;  %v209_v46 = vld [vmem:[%s1553_s5 + $0x78] sm:$0xff]  ;;  %s1120_s18 = sshll.u32 %s1116_s12, 4  ;;  %s1106_s20 = scalar_lea.sflag [#allocation5], %s1549_s29  ;;  %s1121_s18 = int_to_ptr.hbm [resolvable:$true] %s1120_s18 }
  0x32   : > { %v256_v26 = vsel %vm231_vm0, %v223_v23, 0.0  ;;  %v250_v27 = vsel %vm231_vm0, %v221_v24, 0.0  ;;  %v228_v40 = vmul.f32 %v1274_v1, %v207_v37  ;;  %v229_v41 = vmul.f32 %v1274_v1, %v208_v38  ;;  %s1383_s21 = sshra.s32 %s1121_s18, 4  ;;  %s1389_s30 = scalar_lea.hbm %s2236_s3, 16  ;;  %s1384_s21 = int_to_ptr.hbm [resolvable:$true] %s1383_s21 }
  0x33   : > { %v262_v34 = vsel %vm231_vm0, %v225_v31, 0.0  ;;  %v265_v35 = vsel %vm231_vm0, %v226_v32, 0.0  ;;  %v259_v36 = vsel %vm231_vm0, %v224_v33, 0.0  ;;  %v227_v42 = vmul.f32 %v1274_v1, %v206_v39  ;;  %s1385_s23 = scalar_lea.hbm %s1384_s21, 8  ;;  %p1390_p0 = scmp.lt.s32.totalorder %s1384_s21, %s2236_s3 }
  0x34   : > { %v271_v43 = vsel %vm231_vm0, %v228_v40, 0.0  ;;  %v274_v44 = vsel %vm231_vm0, %v229_v41, 0.0  ;;  %v230_v47 = vmul.f32 %v1274_v1, %v209_v46  ;;  %v280_v60 = vstv %s211_s24  ;;  %p1386_p6 = scmp.ne.s32.totalorder %s1384_s21, %s1385_s23  ;;  %p1391_p1 = scmp.lt.s32.totalorder %s1389_s30, %s1385_s23 }
  0x35   : > { %v268_v45 = vsel %vm231_vm0, %v227_v42, 0.0  ;;  %v1600_v63 = vadd.s32 4294967288, %v1595_v59  ;;  %vm2241_vm4 = vcmask 1043459   ;;  %vm2240_vm5 = vcmask 1044484  }
  0x36   : > { %v277_v48 = vsel %vm231_vm0, %v230_v47, 0.0  ;;  %vm2239_vm6 = vcmask 1045509   ;;  %vm2238_vm7 = vcmask 1046534   ;;  %vm2237_vm8 = vcmask 1047559   ;;  %p1387_p9 = pnand %p1386_p6, %p1513_p11  ;;  %p1392_p3 = por %p1391_p1, %p1390_p0 }
  0x37   : > { %vm356_vm9 = vcmask 130048  }
  0x38   : > { %248 = vadd.xlane.f32.xlu2 %v247_v16  ;;  %242 = vadd.xlane.f32.xlu1 %v241_v17  ;;  %p1388_p13 = pneg %p1387_p9 }
  0x39   : > { %236 = vadd.xlane.f32.xlu0 %v235_v18 }
  0x3a   : > { %p1393_p4 = pnand %p1392_p3, %p1388_p13 }
  0x40   : > { %254 = vadd.xlane.f32.xlu1 %v253_v25  ;;  %257 = vadd.xlane.f32.xlu2 %v256_v26 }
  0x41   : > { %251 = vadd.xlane.f32.xlu0 %v250_v27 }
  0x48   : > { %263 = vadd.xlane.f32.xlu1 %v262_v34  ;;  %266 = vadd.xlane.f32.xlu2 %v265_v35 }
  0x49   : > { %260 = vadd.xlane.f32.xlu0 %v259_v36 }
  0x50   : > { %272 = vadd.xlane.f32.xlu1 %v271_v43  ;;  %275 = vadd.xlane.f32.xlu2 %v274_v44 }
  0x51   : > { %269 = vadd.xlane.f32.xlu0 %v268_v45 }
  0x59   : > { %278 = vadd.xlane.f32.xlu0 %v277_v48 }
  0xa3   : > { %v246_v49 = vpop.xlane.xlu2 %245  ;;  %v240_v50 = vpop.xlane.xlu1 %239 }
  0xa4   : > { %v234_v51 = vpop.xlane.xlu0 %233  ;;  %v1597_v62 = vadd.f32 %v280_v60, %v240_v50  ;;  %v1608_v5 = vadd.f32 %v280_v60, %v246_v49 }
  0xa5   : > { %v1606_v3 = vadd.f32 %v280_v60, %v234_v51 }
  0xa6   : > { %v320_v6 = vperm.slane %v1597_v62, %v1595_v59  ;;  %v323_v16 = vperm.slane %v1608_v5, %v1595_v59 }
  0xa7   : > { %v315_v12 = vperm.slane %v1606_v3, %v1595_v59 }
  0xab   : > { %v249_v52 = vpop.xlane.xlu2 %248  ;;  %v243_v53 = vpop.xlane.xlu1 %242 }
  0xac   : > { %v237_v54 = vpop.xlane.xlu0 %236  ;;  %v1602_v0 = vadd.f32 %v280_v60, %v243_v53  ;;  %v1612_v7 = vadd.f32 %v280_v60, %v249_v52  ;;  %v1439_v53 = vmov 0  }
  0xad   : > { %v1604_v1 = vadd.f32 %v280_v60, %v237_v54  ;;  %1258 = vset.pattern.permute.xlu1 %v1439_v53  ;;  %1257 = vset.pattern.permute.xlu0 %v1439_v53 }
  0xae   : > { %v321_v8 = vperm.slane %v1602_v0, %v1600_v63  ;;  %v324_v17 = vperm.slane %v1612_v7, %v1600_v63  ;;  %1256 = vset.pattern.permute.xlu2 %v1439_v53 }
  0xaf   : > { %v317_v9 = vperm.slane %v1604_v1, %v1600_v63 }
  0xb0   : > { %v322_v18 = vsel %vm318_vm1, %v321_v8, %v320_v6  ;;  %v325_v30 = vsel %vm318_vm1, %v324_v17, %v323_v16 }
  0xb1   : > { %v319_v19 = vsel %vm318_vm1, %v317_v9, %v315_v12 }
  0xb2   : > { %v342_v31 = vsel %vm341_vm2, %v322_v18, %v319_v19 }
  0xb3   : > { %v255_v55 = vpop.xlane.xlu1 %254  ;;  %v258_v57 = vpop.xlane.xlu2 %257  ;;  %v344_v39 = vsel %vm343_vm3, %v325_v30, %v342_v31 }
  0xb4   : > { %v252_v56 = vpop.xlane.xlu0 %251  ;;  %v1618_v10 = vadd.f32 %v280_v60, %v255_v55  ;;  %v1624_v13 = vadd.f32 %v280_v60, %v258_v57 }
  0xb5   : > { %v1620_v11 = vadd.f32 %v280_v60, %v252_v56 }
  0xb6   : > { %v327_v21 = vperm.slane %v1618_v10, %v1600_v63  ;;  %v329_v25 = vperm.slane %v1624_v13, %v1595_v59 }
  0xb7   : > { %v326_v22 = vperm.slane %v1620_v11, %v1595_v59 }
  0xb9   : > { %v328_v32 = vsel %vm318_vm1, %v327_v21, %v326_v22 }
  0xba   : > { %v346_v40 = vsel %vm2241_vm4, %v328_v32, %v344_v39 }
  0xbb   : > { %v264_v61 = vpop.xlane.xlu1 %263  ;;  %v267_v4 = vpop.xlane.xlu2 %266 }
  0xbc   : > { %v261_v2 = vpop.xlane.xlu0 %260  ;;  %v1638_v23 = vadd.f32 %v280_v60, %v264_v61  ;;  %v1640_v24 = vadd.f32 %v280_v60, %v267_v4 }
  0xbd   : > { %v1626_v14 = vadd.f32 %v280_v60, %v261_v2 }
  0xbe   : > { %v332_v33 = vperm.slane %v1638_v23, %v1595_v59  ;;  %v333_v34 = vperm.slane %v1640_v24, %v1600_v63 }
  0xbf   : > { %v330_v26 = vperm.slane %v1626_v14, %v1600_v63 }
  0xc0   : > { %v334_v42 = vsel %vm318_vm1, %v333_v34, %v332_v33 }
  0xc1   : > { %v331_v36 = vsel %vm318_vm1, %v330_v26, %v329_v25 }
  0xc2   : > { %v348_v45 = vsel %vm2240_vm5, %v331_v36, %v346_v40 }
  0xc3   : > { %v273_v15 = vpop.xlane.xlu1 %272  ;;  %v276_v29 = vpop.xlane.xlu2 %275  ;;  %v350_v48 = vsel %vm2239_vm6, %v334_v42, %v348_v45 }
  0xc4   : > { %v270_v20 = vpop.xlane.xlu0 %269  ;;  %v1646_v27 = vadd.f32 %v280_v60, %v273_v15  ;;  %v1657_v35 = vadd.f32 %v280_v60, %v276_v29 }
  0xc5   : > { %v1648_v28 = vadd.f32 %v280_v60, %v270_v20 }
  0xc6   : > { %v336_v37 = vperm.slane %v1646_v27, %v1600_v63  ;;  %v338_v43 = vperm.slane %v1657_v35, %v1595_v59 }
  0xc7   : > { %v335_v38 = vperm.slane %v1648_v28, %v1595_v59 }
  0xc9   : > { %v337_v46 = vsel %vm318_vm1, %v336_v37, %v335_v38 }
  0xca   : > { %v352_v50 = vsel %vm2238_vm7, %v337_v46, %v350_v48 }
  0xcc   : > { %v279_v41 = vpop.xlane.xlu0 %278 }
  0xcd   : > { %v1669_v44 = vadd.f32 %v280_v60, %v279_v41 }
  0xcf   : > { %v339_v47 = vperm.slane %v1669_v44, %v1600_v63 }
  0xd1   : > { %v340_v49 = vsel %vm318_vm1, %v339_v47, %v338_v43 }
  0xd2   : > { %v354_v51 = vsel %vm2237_vm8, %v340_v49, %v352_v50 }
  0xd3   : > { %v357_v52 = vsel %vm356_vm9, %v354_v51, -inf }
  0xd4   : > { %358 = vmax.xlane.f32.xlu1 %v357_v52 }
 0x147   : > { %v1683_v54 = vpop.xlane.xlu1 %358 }
 0x148   : > { %v362_v55 = vperm.slane %v1683_v54, 1  ;;  %v361_v56 = vperm.slane %v1683_v54, 0  ;;  %v363_v2 = vperm.slane %v1683_v54, 2  ;;  %v365_v4 = vperm.slane %v1683_v54, 4 }
 0x149   : > { %v366_v17 = vperm.slane %v1683_v54, 5  ;;  %v368_v26 = vperm.slane %v1683_v54, 7  ;;  %v367_v34 = vperm.slane %v1683_v54, 6 }
 0x14a   : > { %v379_v57 = vsub.f32 %v1597_v62, %v362_v55  ;;  %v378_v60 = vsub.f32 %v1604_v1, %v361_v56  ;;  %v377_v61 = vsub.f32 %v1606_v3, %v361_v56  ;;  %v382_v12 = vsub.f32 %v1612_v7, %v363_v2 }
 0x14b   : > { %v385_v15 = vsub.f32 %v1624_v13, %v365_v4  ;;  %v380_v62 = vsub.f32 %v1602_v0, %v362_v55  ;;  %v364_v1 = vperm.slane %v1683_v54, 3  ;;  %v388_v13 = vsub.f32 %v1640_v24, %v366_v17 }
 0x14c   : > { %v397_v6 = vmul.f32 1.442695, %v379_v57  ;;  %v395_v8 = vmul.f32 1.442695, %v378_v60  ;;  %v393_v9 = vmul.f32 1.442695, %v377_v61  ;;  %v381_v21 = vsub.f32 %v1608_v5, %v363_v2 }
 0x14d   : > { %v403_v16 = vmul.f32 1.442695, %v382_v12  ;;  %v409_v3 = vmul.f32 1.442695, %v385_v15  ;;  %v399_v19 = vmul.f32 1.442695, %v380_v62  ;;  %v384_v0 = vsub.f32 %v1618_v10, %v364_v1 }
 0x14e   : > { %1275 = vpow2.f32 %v397_v6  ;;  %v415_v25 = vmul.f32 1.442695, %v388_v13  ;;  %v401_v30 = vmul.f32 1.442695, %v381_v21  ;;  %v387_v24 = vsub.f32 %v1638_v23, %v366_v17 }
 0x14f   : > { %1277 = vpow2.f32 %v395_v8  ;;  %v407_v22 = vmul.f32 1.442695, %v384_v0  ;;  %v391_v5 = vsub.f32 %v1657_v35, %v368_v26  ;;  %v383_v32 = vsub.f32 %v1620_v11, %v364_v1 }
 0x150   : > { %1279 = vpow2.f32 %v393_v9  ;;  %v413_v33 = vmul.f32 1.442695, %v387_v24  ;;  %v390_v35 = vsub.f32 %v1646_v27, %v367_v34  ;;  %v386_v11 = vsub.f32 %v1626_v14, %v365_v4 }
 0x151   : > { %1281 = vpow2.f32 %v403_v16  ;;  %v421_v36 = vmul.f32 1.442695, %v391_v5  ;;  %v405_v38 = vmul.f32 1.442695, %v383_v32  ;;  %v389_v27 = vsub.f32 %v1648_v28, %v367_v34 }
 0x152   : > { %1283 = vpow2.f32 %v409_v3  ;;  %v419_v40 = vmul.f32 1.442695, %v390_v35  ;;  %v411_v42 = vmul.f32 1.442695, %v386_v11  ;;  %v392_v48 = vsub.f32 %v1669_v44, %v368_v26 }
 0x153   : > { %1285 = vpow2.f32 %v399_v19  ;;  %v417_v14 = vmul.f32 1.442695, %v389_v27  ;;  %v1758_v60 = vshrl.u32 %v313_v58, 7 }
 0x154   : > { %v1697_v18 = vpop.eup %1275  ;;  %1287 = vpow2.f32 %v407_v22  ;;  %v423_v49 = vmul.f32 1.442695, %v392_v48 }
 0x155   : > { %v1699_v20 = vpop.eup %1277  ;;  %448 = vperm.xlu1 %1258, %v1697_v18   ;;  %1289 = vpow2.f32 %v415_v25  ;;  %v1762_v44 = vadd.s32 8, %v1758_v60 }
 0x156   : > { %v1702_v7 = vpop.eup %1279  ;;  %445 = vperm.xlu0 %1257, %v1699_v20   ;;  %1291 = vpow2.f32 %v401_v30 }
 0x157   : > { %442 = vperm.xlu2 %1256, %v1702_v7   ;;  %v1710_v29 = vpop.eup %1281  ;;  %1293 = vpow2.f32 %v413_v33 }
 0x158   : > { %v1712_v31 = vpop.eup %1283  ;;  %1295 = vpow2.f32 %v421_v36 }
 0x159   : > { %v1715_v10 = vpop.eup %1285  ;;  %1297 = vpow2.f32 %v405_v38 }
 0x15a   : > { %v1723_v37 = vpop.eup %1287  ;;  %1299 = vpow2.f32 %v419_v40 }
 0x15b   : > { %v1725_v39 = vpop.eup %1289  ;;  %1301 = vpow2.f32 %v411_v42 }
 0x15c   : > { %v1728_v23 = vpop.eup %1291  ;;  %1303 = vpow2.f32 %v417_v14 }
 0x15d   : > { %457 = vperm.xlu1 %1258, %v1710_v29   ;;  %v1734_v41 = vpop.eup %1293  ;;  %1305 = vpow2.f32 %v423_v49 }
 0x15e   : > { %466 = vperm.xlu0 %1257, %v1712_v31   ;;  %v1736_v43 = vpop.eup %1295 }
 0x15f   : > { %451 = vperm.xlu2 %1256, %v1715_v10   ;;  %v1739_v45 = vpop.eup %1297 }
 0x160   : > { %v1744_v46 = vpop.eup %1299 }
 0x161   : > { %v1747_v47 = vpop.eup %1301 }
 0x162   : > { %v1751_v50 = vpop.eup %1303 }
 0x163   : > { %v1754_v51 = vpop.eup %1305 }
 0x165   : > { %463 = vperm.xlu1 %1258, %v1723_v37  }
 0x166   : > { %475 = vperm.xlu0 %1257, %v1725_v39  }
 0x167   : > { %454 = vperm.xlu2 %1256, %v1728_v23  }
 0x16d   : > { %472 = vperm.xlu1 %1258, %v1734_v41  }
 0x16e   : > { %484 = vperm.xlu0 %1257, %v1736_v43  }
 0x16f   : > { %460 = vperm.xlu2 %1256, %v1739_v45  }
 0x175   : > { %481 = vperm.xlu1 %1258, %v1744_v46  }
 0x176   : > { %1259 = vset.pattern.permute.xlu0 %v1758_v60 }
 0x177   : > { %469 = vperm.xlu2 %1256, %v1747_v47  }
 0x17e   : > { %564 = vperm.xlu0 %1259, %v1595_v59  }
 0x17f   : > { %478 = vperm.xlu2 %1256, %v1751_v50  }
 0x186   : > { %1262 = vset.pattern.permute.xlu0 %v1439_v53 }
 0x187   : > { %487 = vperm.xlu2 %1256, %v1754_v51  }
 0x18f   : > { %1260 = vset.pattern.permute.xlu2 %v1762_v44 }
 0x197   : > { %570 = vperm.xlu2 %1260, %v1595_v59  }
 0x19f   : > { %1261 = vset.pattern.permute.xlu2 %v1439_v53 }
 0x1b1   : > { %v443_v28 = vpop.permute.xlu2 %442 }
 0x1b2   : > { %v489_v62 = vperm.slane %v443_v28, %v1595_v59 }
 0x1b9   : > { %v452_v52 = vpop.permute.xlu2 %451 }
 0x1ba   : > { %v493_v16 = vperm.slane %v452_v52, %v1600_v63 }
 0x1c1   : > { %v455_v54 = vpop.permute.xlu2 %454 }
 0x1c2   : > { %v495_v17 = vperm.slane %v455_v54, %v1595_v59 }
 0x1c7   : > { %v449_v55 = vpop.permute.xlu1 %448 }
 0x1c8   : > { %v446_v56 = vpop.permute.xlu0 %445  ;;  %v492_v58 = vperm.slane %v449_v55, %v1595_v59 }
 0x1c9   : > { %v461_v57 = vpop.permute.xlu2 %460  ;;  %v490_v12 = vperm.slane %v446_v56, %v1600_v63 }
 0x1ca   : > { %v494_v19 = vsel %vm318_vm1, %v493_v16, %v492_v58  ;;  %v498_v13 = vperm.slane %v461_v57, %v1595_v59 }
 0x1cb   : > { %v491_v0 = vsel %vm318_vm1, %v490_v12, %v489_v62 }
 0x1cc   : > { %v513_v26 = vsel %vm341_vm2, %v494_v19, %v491_v0 }
 0x1cf   : > { %v458_v61 = vpop.permute.xlu1 %457 }
 0x1d0   : > { %v467_v2 = vpop.permute.xlu0 %466  ;;  %v496_v15 = vperm.slane %v458_v61, %v1600_v63 }
 0x1d1   : > { %v470_v4 = vpop.permute.xlu2 %469  ;;  %v501_v30 = vperm.slane %v467_v2, %v1595_v59 }
 0x1d2   : > { %v497_v21 = vsel %vm318_vm1, %v496_v15, %v495_v17  ;;  %v502_v24 = vperm.slane %v470_v4, %v1600_v63 }
 0x1d3   : > { %v514_v32 = vsel %vm343_vm3, %v497_v21, %v513_v26 }
 0x1d4   : > { %v503_v40 = vsel %vm318_vm1, %v502_v24, %v501_v30 }
 0x1d7   : > { %v464_v6 = vpop.permute.xlu1 %463 }
 0x1d8   : > { %v476_v8 = vpop.permute.xlu0 %475  ;;  %v499_v1 = vperm.slane %v464_v6, %v1600_v63 }
 0x1d9   : > { %v479_v9 = vpop.permute.xlu2 %478  ;;  %v505_v33 = vperm.slane %v476_v8, %v1600_v63 }
 0x1da   : > { %v500_v22 = vsel %vm318_vm1, %v499_v1, %v498_v13  ;;  %v507_v42 = vperm.slane %v479_v9, %v1595_v59 }
 0x1db   : > { %v515_v34 = vsel %vm2241_vm4, %v500_v22, %v514_v32 }
 0x1dc   : > { %v516_v14 = vsel %vm2240_vm5, %v503_v40, %v515_v34 }
 0x1df   : > { %v473_v3 = vpop.permute.xlu1 %472 }
 0x1e0   : > { %v504_v25 = vperm.slane %v473_v3, %v1595_v59  ;;  %v485_v5 = vpop.permute.xlu0 %484 }
 0x1e1   : > { %v488_v53 = vpop.permute.xlu2 %487  ;;  %v510_v38 = vperm.slane %v485_v5, %v1595_v59 }
 0x1e2   : > { %v506_v36 = vsel %vm318_vm1, %v505_v33, %v504_v25  ;;  %v511_v35 = vperm.slane %v488_v53, %v1600_v63 }
 0x1e3   : > { %v517_v48 = vsel %vm2239_vm6, %v506_v36, %v516_v14 }
 0x1e4   : > { %v512_v28 = vsel %vm318_vm1, %v511_v35, %v510_v38 }
 0x1e7   : > { %v482_v11 = vpop.permute.xlu1 %481 }
 0x1e8   : > { %v508_v27 = vperm.slane %v482_v11, %v1600_v63 }
 0x1ea   : > { %v509_v49 = vsel %vm318_vm1, %v508_v27, %v507_v42 }
 0x1eb   : > { %v518_v52 = vsel %vm2238_vm7, %v509_v49, %v517_v48 }
 0x1ec   : > { %v1800_v54 = vsel %vm2237_vm8, %v512_v28, %v518_v52 }
 0x1ed   : > { %v524_v55 = vsel %vm356_vm9, %v1800_v54, -inf }
 0x1ee   : > { %525 = vmax.xlane.f32.xlu1 %v524_v55 }
 0x1f0   : > { %v565_v57 = vpop.permute.xlu0 %564 }
 0x1f1   : > { %v571_v61 = vpop.permute.xlu2 %570 }
 0x261   : > { %v526_v56 = vpop.xlane.xlu1 %525 }
 0x262   : > { %v531_v2 = vperm.slane %v526_v56, 3  ;;  %v528_v4 = vperm.slane %v526_v56, 0  ;;  %v529_v58 = vperm.slane %v526_v56, 1  ;;  %v534_v12 = vperm.slane %v526_v56, 6 }
 0x263   : > { %v530_v15 = vperm.slane %v526_v56, 2  ;;  %v533_v1 = vperm.slane %v526_v56, 5  ;;  %v535_v3 = vperm.slane %v526_v56, 7 }
 0x264   : > { %vm550_vm10 = vcmp.ge.f32.partialorder %v1739_v45, %v531_v2  ;;  %vm544_vm11 = vcmp.ge.f32.partialorder %v1702_v7, %v528_v4  ;;  %vm545_vm12 = vcmp.ge.f32.partialorder %v1699_v20, %v528_v4  ;;  %vm546_vm13 = vcmp.ge.f32.partialorder %v1697_v18, %v529_v58 }
 0x265   : > { %v578_v6 = vsel %vm550_vm10, %v565_v57, 16  ;;  %v572_v8 = vsel %vm544_vm11, %v565_v57, 16  ;;  %v573_v9 = vsel %vm545_vm12, %v571_v61, 16  ;;  %vm557_vm14 = vcmp.ge.f32.partialorder %v1744_v46, %v534_v12 }
 0x266   : > { %607 = vperm.xlu1 %1258, %v578_v6   ;;  %589 = vperm.xlu2 %1261, %v572_v8   ;;  %vm548_vm15 = vcmp.ge.f32.partialorder %v1728_v23, %v530_v15  ;;  %v574_v45 = vsel %vm546_vm13, %v565_v57, 16  ;;  %v585_v62 = vsel %vm557_vm14, %v571_v61, 16  ;;  %vm547_vm10 = vcmp.ge.f32.partialorder %v1715_v10, %v529_v58 }
 0x267   : > { %592 = vperm.xlu0 %1262, %v573_v9   ;;  %v576_v20 = vsel %vm548_vm15, %v565_v57, 16  ;;  %vm551_vm11 = vcmp.ge.f32.partialorder %v1723_v37, %v531_v2  ;;  %v575_v7 = vsel %vm547_vm10, %v571_v61, 16  ;;  %v532_v18 = vperm.slane %v526_v56, 4 }
 0x268   : > { %v579_v16 = vsel %vm551_vm11, %v571_v61, 16  ;;  %vm549_vm12 = vcmp.ge.f32.partialorder %v1710_v29, %v530_v15  ;;  %vm555_vm15 = vcmp.ge.f32.partialorder %v1725_v39, %v533_v1  ;;  %vm554_vm10 = vcmp.ge.f32.partialorder %v1734_v41, %v533_v1 }
 0x269   : > { %vm553_vm13 = vcmp.ge.f32.partialorder %v1747_v47, %v532_v18  ;;  %v577_v23 = vsel %vm549_vm12, %v571_v61, 16  ;;  %vm552_vm14 = vcmp.ge.f32.partialorder %v1712_v31, %v532_v18  ;;  %v583_v37 = vsel %vm555_vm15, %v571_v61, 16 }
 0x26a   : > { %v581_v46 = vsel %vm553_vm13, %v571_v61, 16  ;;  %v580_v10 = vsel %vm552_vm14, %v565_v57, 16  ;;  %vm558_vm11 = vcmp.ge.f32.partialorder %v1736_v43, %v535_v3  ;;  %v582_v29 = vsel %vm554_vm10, %v565_v57, 16 }
 0x26b   : > { %v586_v47 = vsel %vm558_vm11, %v565_v57, 16  ;;  %vm556_vm12 = vcmp.ge.f32.partialorder %v1751_v50, %v534_v12  ;;  %vm559_vm13 = vcmp.ge.f32.partialorder %v1754_v51, %v535_v3 }
 0x26c   : > { %v584_v17 = vsel %vm556_vm12, %v565_v57, 16  ;;  %v587_v31 = vsel %vm559_vm13, %v571_v61, 16 }
 0x26e   : > { %595 = vperm.xlu2 %1261, %v574_v45   ;;  %628 = vperm.xlu1 %1258, %v585_v62  }
 0x26f   : > { %601 = vperm.xlu0 %1262, %v576_v20  }
 0x276   : > { %598 = vperm.xlu2 %1261, %v575_v7   ;;  %1263 = vset.pattern.permute.xlu1 %v1758_v60 }
 0x277   : > { %610 = vperm.xlu0 %1262, %v579_v16  }
 0x27e   : > { %604 = vperm.xlu2 %1261, %v577_v23  }
 0x27f   : > { %616 = vperm.xlu0 %1262, %v581_v46  }
 0x286   : > { %613 = vperm.xlu2 %1261, %v580_v10  }
 0x287   : > { %622 = vperm.xlu0 %1262, %v583_v37  }
 0x28e   : > { %619 = vperm.xlu2 %1261, %v582_v29  }
 0x28f   : > { %631 = vperm.xlu0 %1262, %v586_v47  }
 0x296   : > { %625 = vperm.xlu2 %1261, %v584_v17  }
 0x297   : > { %1265 = vset.pattern.permute.xlu0 %v1758_v60 }
 0x29e   : > { %634 = vperm.xlu2 %1261, %v587_v31  }
 0x2a6   : > { %1264 = vset.pattern.permute.xlu2 %v1762_v44 }
 0x2c0   : > { %v590_v39 = vpop.permute.xlu2 %589 }
 0x2c1   : > { %v636_v5 = vperm.slane %v590_v39, %v1595_v59 }
 0x2c8   : > { %v596_v41 = vpop.permute.xlu2 %595 }
 0x2c9   : > { %v639_v38 = vperm.slane %v596_v41, %v1595_v59 }
 0x2d0   : > { %v599_v19 = vpop.permute.xlu2 %598 }
 0x2d1   : > { %v640_v53 = vperm.slane %v599_v19, %v1600_v63 }
 0x2d3   : > { %v641_v14 = vsel %vm318_vm1, %v640_v53, %v639_v38 }
 0x2d8   : > { %v605_v43 = vpop.permute.xlu2 %604  ;;  %v608_v26 = vpop.permute.xlu1 %607 }
 0x2d9   : > { %v593_v0 = vpop.permute.xlu0 %592  ;;  %v643_v33 = vperm.slane %v605_v43, %v1600_v63  ;;  %v645_v35 = vperm.slane %v608_v26, %v1595_v59 }
 0x2da   : > { %v637_v24 = vperm.slane %v593_v0, %v1600_v63 }
 0x2dc   : > { %v638_v11 = vsel %vm318_vm1, %v637_v24, %v636_v5 }
 0x2dd   : > { %v660_v28 = vsel %vm341_vm2, %v641_v14, %v638_v11 }
 0x2e0   : > { %v614_v21 = vpop.permute.xlu2 %613  ;;  %v629_v55 = vpop.permute.xlu1 %628 }
 0x2e1   : > { %v602_v13 = vpop.permute.xlu0 %601  ;;  %v648_v27 = vperm.slane %v614_v21, %v1595_v59  ;;  %v655_v8 = vperm.slane %v629_v55, %v1600_v63 }
 0x2e2   : > { %v642_v51 = vperm.slane %v602_v13, %v1595_v59 }
 0x2e4   : > { %v644_v42 = vsel %vm318_vm1, %v643_v33, %v642_v51 }
 0x2e5   : > { %v661_v56 = vsel %vm343_vm3, %v644_v42, %v660_v28 }
 0x2e8   : > { %v620_v25 = vpop.permute.xlu2 %619 }
 0x2e9   : > { %v611_v22 = vpop.permute.xlu0 %610  ;;  %v651_v49 = vperm.slane %v620_v25, %v1595_v59 }
 0x2ea   : > { %v646_v32 = vperm.slane %v611_v22, %v1600_v63 }
 0x2ec   : > { %v647_v48 = vsel %vm318_vm1, %v646_v32, %v645_v35 }
 0x2ed   : > { %v662_v61 = vsel %vm2241_vm4, %v647_v48, %v661_v56 }
 0x2f0   : > { %v626_v30 = vpop.permute.xlu2 %625 }
 0x2f1   : > { %v617_v50 = vpop.permute.xlu0 %616  ;;  %v654_v2 = vperm.slane %v626_v30, %v1595_v59 }
 0x2f2   : > { %v649_v34 = vperm.slane %v617_v50, %v1600_v63 }
 0x2f3   : > { %v656_v45 = vsel %vm318_vm1, %v655_v8, %v654_v2 }
 0x2f4   : > { %v650_v52 = vsel %vm318_vm1, %v649_v34, %v648_v27 }
 0x2f5   : > { %v663_v6 = vsel %vm2240_vm5, %v650_v52, %v662_v61 }
 0x2f8   : > { %v635_v4 = vpop.permute.xlu2 %634 }
 0x2f9   : > { %v623_v36 = vpop.permute.xlu0 %622  ;;  %v658_v12 = vperm.slane %v635_v4, %v1600_v63  ;;  %v521_v4 = vsel %vm356_vm9, %v1800_v54, 0.0 }
 0x2fa   : > { %v652_v40 = vperm.slane %v623_v36, %v1600_v63 }
 0x2fc   : > { %v653_v57 = vsel %vm318_vm1, %v652_v40, %v651_v49 }
 0x2fd   : > { %v664_v9 = vsel %vm2239_vm6, %v653_v57, %v663_v6 }
 0x2fe   : > { %v665_v20 = vsel %vm2238_vm7, %v656_v45, %v664_v9 }
 0x301   : > { %v632_v58 = vpop.permute.xlu0 %631 }
 0x302   : > { %v657_v15 = vperm.slane %v632_v58, %v1595_v59 }
 0x304   : > { %v659_v62 = vsel %vm318_vm1, %v658_v12, %v657_v15 }
 0x305   : > { %v666_v7 = vsel %vm2237_vm8, %v659_v62, %v665_v20 }
 0x306   : > { %v667_v16 = vsel %vm356_vm9, %v666_v7, 2147483647 }
 0x307   : > { %v669_v18 = vshra.s32 %v667_v16, 16  ;;  %v668_v46 = vand.u32 65535, %v667_v16 }
 0x309   : > { %v671_v23 = vcvt.s32.f32 %v669_v18  ;;  %v670_v10 = vcvt.s32.f32 %v668_v46 }
 0x30b   : > { %672 = vmin.xlane.f32.xlu1 %v671_v23 }
 0x37e   : > { %v673_v1 = vpop.xlane.xlu1 %672 }
 0x37f   : > { %vm674_vm14 = vcmp.eq.f32.partialorder %v671_v23, %v673_v1  ;;  %v679_v37 = vcvt.f32.s32 %v673_v1 }
 0x380   : > { %v675_v63 = vsel %vm674_vm14, %v670_v10, inf }
 0x381   : > { %676 = vmin.xlane.f32.xlu0 %v675_v63  ;;  %v680_v29 = vshll.u32 %v679_v37, 16 }
 0x3f4   : > { %v677_v3 = vpop.xlane.xlu0 %676 }
 0x3f5   : > { %v678_v47 = vcvt.f32.s32 %v677_v3 }
 0x3f7   : > { %v681_v17 = vadd.s32 %v680_v29, %v678_v47 }
 0x3f9   : > { %vm682_vm1 = vcmp.eq.s32.totalorder %v1595_v59, %v681_v17 }
 0x3fa   : > { %v684_v31 = vsel %vm682_vm1, -1.0, %v1800_v54  ;;  %v683_v53 = vsel %vm682_vm1, %v1800_v54, 0.0 }
 0x3fb   : > { %v685_v39 = vsel %vm356_vm9, %v684_v31, -inf }
 0x3fc   : > { %686 = vmax.xlane.f32.xlu2 %v685_v39 }
 0x46f   : > { %v687_v41 = vpop.xlane.xlu2 %686 }
 0x470   : > { %vm688_vm15 = vcmp.ge.f32.partialorder %v684_v31, %v687_v41 }
 0x471   : > { %v689_v19 = vsel %vm688_vm15, %v1595_v59, 16 }
 0x472   : > { %v690_v43 = vsel %vm356_vm9, %v689_v19, 2147483647 }
 0x473   : > { %v692_v0 = vshra.s32 %v690_v43, 16  ;;  %v691_v21 = vand.u32 65535, %v690_v43 }
 0x475   : > { %v694_v13 = vcvt.s32.f32 %v692_v0  ;;  %v693_v25 = vcvt.s32.f32 %v691_v21 }
 0x477   : > { %695 = vmin.xlane.f32.xlu1 %v694_v13 }
 0x4ea   : > { %v696_v22 = vpop.xlane.xlu1 %695 }
 0x4eb   : > { %vm697_vm10 = vcmp.eq.f32.partialorder %v694_v13, %v696_v22  ;;  %v702_v26 = vcvt.f32.s32 %v696_v22 }
 0x4ec   : > { %v698_v50 = vsel %vm697_vm10, %v693_v25, inf }
 0x4ed   : > { %699 = vmin.xlane.f32.xlu2 %v698_v50  ;;  %v703_v24 = vshll.u32 %v702_v26, 16 }
 0x560   : > { %v700_v30 = vpop.xlane.xlu2 %699 }
 0x561   : > { %v701_v51 = vcvt.f32.s32 %v700_v30 }
 0x563   : > { %v704_v5 = vadd.s32 %v703_v24, %v701_v51 }
 0x565   : > { %vm705_vm11 = vcmp.eq.s32.totalorder %v1595_v59, %v704_v5 }
 0x566   : > { %v706_v32 = vsel %vm705_vm11, %v684_v31, %v683_v53  ;;  %v707_v33 = vsel %vm705_vm11, -1.0, %v684_v31 }
 0x567   : > { %v708_v34 = vsel %vm356_vm9, %v707_v33, -inf }
 0x568   : > { %709 = vmax.xlane.f32.xlu0 %v708_v34 }
 0x5db   : > { %v710_v36 = vpop.xlane.xlu0 %709 }
 0x5dc   : > { %vm711_vm12 = vcmp.ge.f32.partialorder %v707_v33, %v710_v36 }
 0x5dd   : > { %v712_v38 = vsel %vm711_vm12, %v1595_v59, 16 }
 0x5de   : > { %v713_v35 = vsel %vm356_vm9, %v712_v38, 2147483647 }
 0x5df   : > { %v715_v11 = vshra.s32 %v713_v35, 16  ;;  %v714_v42 = vand.u32 65535, %v713_v35  ;;  %v1323_v35 = vld [vmem:[%s1553_s5 + $0x18] sm:$0xff] }
 0x5e1   : > { %v717_v40 = vcvt.s32.f32 %v715_v11  ;;  %v716_v14 = vcvt.s32.f32 %v714_v42 }
 0x5e3   : > { %718 = vmin.xlane.f32.xlu1 %v717_v40 }
 0x656   : > { %v719_v27 = vpop.xlane.xlu1 %718 }
 0x657   : > { %vm720_vm13 = vcmp.eq.f32.partialorder %v717_v40, %v719_v27  ;;  %v725_v49 = vcvt.f32.s32 %v719_v27 }
 0x658   : > { %v721_v48 = vsel %vm720_vm13, %v716_v14, inf  ;;  %v1324_v14 = vld [vmem:[%s1553_s5 + $0x28] sm:$0xff] }
 0x659   : > { %722 = vmin.xlane.f32.xlu2 %v721_v48  ;;  %v726_v52 = vshll.u32 %v725_v49, 16 }
 0x6cc   : > { %v723_v28 = vpop.xlane.xlu2 %722 }
 0x6cd   : > { %v724_v55 = vcvt.f32.s32 %v723_v28  ;;  %v1325_v28 = vld [vmem:[%s1553_s5 + $0x10] sm:$0xff] }
 0x6cf   : > { %v727_v56 = vadd.s32 %v726_v52, %v724_v55 }
 0x6d1   : > { %vm728_vm14 = vcmp.eq.s32.totalorder %v1595_v59, %v727_v56 }
 0x6d2   : > { %v730_v57 = vsel %vm728_vm14, -1.0, %v707_v33  ;;  %v729_v61 = vsel %vm728_vm14, %v707_v33, %v706_v32 }
 0x6d3   : > { %v731_v2 = vsel %vm356_vm9, %v730_v57, -inf }
 0x6d4   : > { %732 = vmax.xlane.f32.xlu0 %v731_v2  ;;  %v1327_v2 = vld [vmem:[%s1553_s5 + $0x20] sm:$0xff] }
 0x6dc   : > { %522 = vadd.xlane.f32.xlu0 %v521_v4 }
 0x747   : > { %v733_v6 = vpop.xlane.xlu0 %732 }
 0x748   : > { %vm734_vm1 = vcmp.ge.f32.partialorder %v730_v57, %v733_v6 }
 0x749   : > { %v735_v8 = vsel %vm734_vm1, %v1595_v59, 16 }
 0x74a   : > { %v736_v9 = vsel %vm356_vm9, %v735_v8, 2147483647 }
 0x74b   : > { %v738_v58 = vshra.s32 %v736_v9, 16  ;;  %v737_v15 = vand.u32 65535, %v736_v9  ;;  %v1328_v9 = vld [vmem:[%s1553_s5 + $0x30] sm:$0xff] }
 0x74d   : > { %v740_v12 = vcvt.s32.f32 %v738_v58  ;;  %v739_v62 = vcvt.s32.f32 %v737_v15 }
 0x74f   : > { %741 = vmin.xlane.f32.xlu1 %v740_v12  ;;  %v1886_v43 = vpop.xlane.xlu0 %522 }
 0x750   : > { %1307 = vrcp.f32 %v1886_v43  ;;  %v1892_v13 = vrot.slane %v1886_v43, 4  ;;  %v1895_v21 = vrot.slane %v1886_v43, 1  ;;  %v1899_v22 = vrot.slane %v1886_v43, 2 }
 0x751   : > { %v970_v24 = vand.u32 2147483647, %v1886_v43  ;;  %v1908_v5 = vrot.slane %v1886_v43, 3  ;;  %v1916_v36 = vrot.slane %v1886_v43, 5  ;;  %v1922_v40 = vrot.slane %v1886_v43, 6 }
 0x752   : > { %1309 = vrcp.f32 %v1892_v13  ;;  %v1032_v26 = vand.u32 2147483648, %v1892_v13  ;;  %v987_v51 = vand.u32 2147483648, %v1895_v21  ;;  %v1002_v34 = vand.u32 2147483648, %v1899_v22 }
 0x753   : > { %v1030_v38 = vand.u32 2147483647, %v1892_v13  ;;  %1311 = vrcp.f32 %v1895_v21  ;;  %v985_v27 = vand.u32 2147483647, %v1895_v21  ;;  %v1000_v56 = vand.u32 2147483647, %v1899_v22 }
 0x754   : > { %v1924_v42 = vor.u32 1.1754944e-38, %v1032_v26  ;;  %1313 = vrcp.f32 %v1899_v22  ;;  %v1932_v55 = vor.u32 1.1754944e-38, %v987_v51  ;;  %v1937_v8 = vor.u32 1.1754944e-38, %v1002_v34  ;;  %v1334_v51 = vld [vmem:[%s1553_s5 + $0x40] sm:$0xff] }
 0x755   : > { %1315 = vrcp.f32 %v1908_v5  ;;  %vm966_vm11 = vweird.f32 %v1886_v43  ;;  %vm1989_vm13 = vcmp.eq.f32.partialorder %v970_v24, 8.507059e+37  ;;  %vm1026_vm14 = vweird.f32 %v1892_v13 }
 0x756   : > { %v1901_v25 = vpop.eup %1307  ;;  %1317 = vrcp.f32 %v1916_v36  ;;  %vm1056_vm5 = vweird.f32 %v1922_v40 }
 0x757   : > { %v962_v53 = vmul.f32 %v1901_v25, %v1886_v43  ;;  %vm967_vm9 = vweird.f32 %v1901_v25  ;;  %1319 = vrcp.f32 %v1922_v40 }
 0x758   : > { %v1929_v49 = vpop.eup %1309 }
 0x759   : > { %v963_v6 = vsub.f32 1.0, %v962_v53  ;;  %vm1027_vm12 = vweird.f32 %v1929_v49 }
 0x75a   : > { %vm2049_vm6 = vmor %vm1026_vm14, %vm1027_vm12  ;;  %vm1041_vm14 = vweird.f32 %v1916_v36 }
 0x7c2   : > { %v742_v45 = vpop.xlane.xlu1 %741 }
 0x7c3   : > { %vm743_vm15 = vcmp.eq.f32.partialorder %v740_v12, %v742_v45  ;;  %v748_v7 = vcvt.f32.s32 %v742_v45  ;;  %v1015_v45 = vand.u32 2147483647, %v1908_v5 }
 0x7c4   : > { %v744_v20 = vsel %vm743_vm15, %v739_v62, inf  ;;  %v1017_v62 = vand.u32 2147483648, %v1908_v5  ;;  %vm2012_vm15 = vmor %vm966_vm11, %vm967_vm9  ;;  %vm981_vm9 = vweird.f32 %v1895_v21  ;;  %vm996_vm11 = vweird.f32 %v1899_v22 }
 0x7c5   : > { %745 = vmin.xlane.f32.xlu2 %v744_v20  ;;  %v749_v18 = vshll.u32 %v748_v7, 16  ;;  %v1022_v20 = vmul.f32 %v1929_v49, %v1892_v13 }
 0x838   : > { %v746_v16 = vpop.xlane.xlu2 %745 }
 0x839   : > { %v747_v54 = vcvt.f32.s32 %v746_v16  ;;  %v1045_v16 = vand.u32 2147483647, %v1916_v36 }
 0x83b   : > { %v750_v23 = vadd.s32 %v749_v18, %v747_v54  ;;  %v1949_v54 = vpop.eup %1311 }
 0x83c   : > { %v977_v34 = vmul.f32 %v1949_v54, %v1895_v21  ;;  %vm982_vm1 = vweird.f32 %v1949_v54 }
 0x83d   : > { %vm751_vm10 = vcmp.eq.s32.totalorder %v1595_v59, %v750_v23  ;;  %vm2087_vm4 = vmor %vm981_vm9, %vm982_vm1  ;;  %vm2133_vm9 = vcmp.eq.f32.partialorder %v1045_v16, 8.507059e+37 }
 0x83e   : > { %v752_v46 = vsel %vm751_vm10, %v730_v57, %v729_v61  ;;  %v1326_v57 = vld [vmem:[%s1553_s5 + $0x38] sm:$0xff]  ;;  %v978_v24 = vsub.f32 1.0, %v977_v34  ;;  %vm2018_vm10 = vcmp.eq.f32.partialorder %v1030_v38, 8.507059e+37 }
 0x83f   : > { %v766_v1 = vperm.slane %v752_v46, 1  ;;  %v753_v10 = vperm.slane %v752_v46, 0  ;;  %v805_v63 = vperm.slane %v752_v46, 4  ;;  %v779_v37 = vperm.slane %v752_v46, 2 }
 0x840   : > { %v792_v3 = vperm.slane %v752_v46, 3  ;;  %v844_v59 = vperm.slane %v752_v46, 7  ;;  %v818_v29 = vperm.slane %v752_v46, 5  ;;  %v831_v47 = vperm.slane %v752_v46, 6  ;;  %v1329_v46 = vld [vmem:[%s1553_s5] sm:$0xff] }
 0x841   : > { %771 = vperm.xlu0 %1265, %v766_v1   ;;  %764 = vperm.xlu2 %1264, %v753_v10  }
 0x842   : > { %758 = vperm.xlu1 %1263, %v753_v10  }
 0x849   : > { %1268 = vset.pattern.permute.xlu0 %v1762_v44  ;;  %1267 = vset.pattern.permute.xlu2 %v1758_v60 }
 0x84a   : > { %1266 = vset.pattern.permute.xlu1 %v1762_v44 }
 0x851   : > { %816 = vperm.xlu0 %1268, %v805_v63   ;;  %784 = vperm.xlu2 %1267, %v779_v37  }
 0x852   : > { %777 = vperm.xlu1 %1266, %v766_v1  }
 0x859   : > { %1271 = vset.pattern.permute.xlu0 %v1758_v60  ;;  %797 = vperm.xlu2 %1267, %v792_v3  }
 0x85a   : > { %790 = vperm.xlu1 %1266, %v779_v37  }
 0x861   : > { %849 = vperm.xlu0 %1271, %v844_v59   ;;  %810 = vperm.xlu2 %1267, %v805_v63   ;;  %v1330_v63 = vld [vmem:[%s1553_s5 + $0x50] sm:$0xff] }
 0x862   : > { %803 = vperm.xlu1 %1266, %v792_v3   ;;  %v1956_v3 = vpop.eup %1313 }
 0x863   : > { %vm997_vm8 = vweird.f32 %v1956_v3 }
 0x864   : > { %vm2108_vm1 = vmor %vm996_vm11, %vm997_vm8 }
 0x869   : > { %1270 = vset.pattern.permute.xlu2 %v1762_v44  ;;  %1273 = vset.pattern.permute.xlu0 %v1762_v44 }
 0x86a   : > { %1269 = vset.pattern.permute.xlu1 %v1758_v60 }
 0x871   : > { %829 = vperm.xlu2 %1270, %v818_v29  }
 0x872   : > { %823 = vperm.xlu1 %1269, %v818_v29   ;;  %v964_v29 = vmul.f32 %v1901_v25, %v963_v6 }
 0x879   : > { %842 = vperm.xlu2 %1270, %v831_v47  }
 0x87a   : > { %836 = vperm.xlu1 %1269, %v831_v47   ;;  %v1331_v47 = vld [vmem:[%s1553_s5 + $0x48] sm:$0xff] }
 0x882   : > { %1272 = vset.pattern.permute.xlu1 %v1762_v44  ;;  %v972_v44 = vand.u32 2147483648, %v1886_v43 }
 0x884   : > { %v1912_v32 = vor.u32 1.1754944e-38, %v972_v44 }
 0x88a   : > { %855 = vperm.xlu1 %1272, %v844_v59  }
 0x89b   : > { %v1884_v17 = vpop.permute.xlu2 %764 }
 0x8ab   : > { %v785_v39 = vpop.permute.xlu2 %784 }
 0x8ac   : > { %v861_v4 = vmul.f32 %v1327_v2, %v785_v39 }
 0x8ae   : > { %v891_v59 = vsel %vm231_vm0, %v861_v4, 0.0 }
 0x8b3   : > { %v798_v19 = vpop.permute.xlu2 %797  ;;  %v772_v50 = vpop.permute.xlu0 %771 }
 0x8b4   : > { %v759_v31 = vpop.permute.xlu1 %758  ;;  %v859_v52 = vmul.f32 %v1325_v28, %v772_v50  ;;  %v863_v58 = vmul.f32 %v1328_v9, %v798_v19  ;;  %v1332_v19 = vld [vmem:[%s1553_s5 + $0x8] sm:$0xff] }
 0x8b5   : > { %v857_v1 = vmul.f32 %v1329_v46, %v759_v31  ;;  %v1333_v31 = vld [vmem:[%s1553_s5 + $0x58] sm:$0xff]  ;;  %v1335_v9 = vld [vmem:[%s1553_s5 + $0x68] sm:$0xff] }
 0x8b6   : > { %v882_v23 = vsel %vm231_vm0, %v859_v52, 0.0  ;;  %v900_v44 = vsel %vm231_vm0, %v863_v58, 0.0 }
 0x8bb   : > { %v1889_v60 = vpop.permute.xlu2 %810 }
 0x8bc   : > { %v865_v53 = vmul.f32 %v1334_v51, %v1889_v60  ;;  %v965_v60 = vadd.f32 %v1901_v25, %v964_v29  ;;  %v1047_v29 = vand.u32 2147483648, %v1916_v36 }
 0x8c3   : > { %v817_v12 = vpop.permute.xlu0 %816 }
 0x8c4   : > { %v778_v41 = vpop.permute.xlu1 %777  ;;  %v866_v39 = vmul.f32 %v1331_v47, %v817_v12 }
 0x8c5   : > { %v860_v11 = vmul.f32 %v1323_v35, %v778_v41 }
 0x8c7   : > { %v883_v15 = vsel %vm231_vm0, %v860_v11, 0.0  ;;  %v1972_v11 = vor.u32 1.1754944e-38, %v1017_v62  ;;  %v909_v62 = vsel %vm231_vm0, %v865_v53, 0.0 }
 0x8c8   : > { %v884_v41 = vadd.f32 %v883_v15, %v882_v23 }
 0x8cb   : > { %v830_v33 = vpop.permute.xlu2 %829 }
 0x8cc   : > { %v791_v0 = vpop.permute.xlu1 %790  ;;  %v868_v50 = vmul.f32 %v1333_v31, %v830_v33  ;;  %v992_v33 = vmul.f32 %v1956_v3, %v1899_v22 }
 0x8cd   : > { %v862_v48 = vmul.f32 %v1324_v14, %v791_v0  ;;  %v858_v0 = vmul.f32 %v1332_v19, %v1884_v17  ;;  %v873_v14 = vsel %vm231_vm0, %v857_v1, 0.0  ;;  %v1336_v1 = vld [vmem:[%s1553_s5 + $0x60] sm:$0xff] }
 0x8ce   : > { %v919_v4 = vsel %vm231_vm0, %v868_v50, 0.0  ;;  %v993_v47 = vsub.f32 1.0, %v992_v33  ;;  %v979_v33 = vmul.f32 %v1949_v54, %v978_v24 }
 0x8cf   : > { %v892_v7 = vsel %vm231_vm0, %v862_v48, 0.0  ;;  %v1023_v48 = vsub.f32 1.0, %v1022_v20  ;;  %v874_v2 = vsel %vm231_vm0, %v858_v0, 0.0 }
 0x8d0   : > { %v893_v26 = vadd.f32 %v892_v7, %v891_v59  ;;  %v875_v15 = vadd.f32 %v874_v2, %v873_v14  ;;  %v980_v13 = vadd.f32 %v1949_v54, %v979_v33  ;;  %v1338_v33 = vld [vmem:[%s1553_s5 + $0x78] sm:$0xff] }
 0x8d1   : > { %v1024_v23 = vmul.f32 %v1929_v49, %v1023_v48 }
 0x8d2   : > { %v894_v6 = vrot.slane %v893_v26, 4  ;;  %v876_v31 = vrot.slane %v875_v15, 4  ;;  %v984_v21 = vsel %vm2087_vm4, %v1949_v54, %v980_v13 }
 0x8d3   : > { %v843_v35 = vpop.permute.xlu2 %842  ;;  %v1025_v34 = vadd.f32 %v1929_v49, %v1024_v23 }
 0x8d4   : > { %v804_v30 = vpop.permute.xlu1 %803  ;;  %v870_v58 = vmul.f32 %v1335_v9, %v843_v35 }
 0x8d5   : > { %v864_v61 = vmul.f32 %v1326_v57, %v804_v30  ;;  %v1966_v30 = vpop.eup %1315  ;;  %v910_v57 = vsel %vm231_vm0, %v866_v39, 0.0  ;;  %v895_v39 = vadd.f32 %v894_v6, %v893_v26 }
 0x8d6   : > { %v1978_v52 = vpop.eup %1317  ;;  %v911_v46 = vadd.f32 %v910_v57, %v909_v62  ;;  %v1007_v59 = vmul.f32 %v1966_v30, %v1908_v5  ;;  %v928_v19 = vsel %vm231_vm0, %v870_v58, 0.0  ;;  %vm1012_vm7 = vweird.f32 %v1966_v30 }
 0x8d7   : > { %v901_v10 = vsel %vm231_vm0, %v864_v61, 0.0  ;;  %v885_v61 = vrot.slane %v884_v41, 4  ;;  %v877_v57 = vadd.f32 %v876_v31, %v875_v15  ;;  %v1060_v15 = vand.u32 2147483647, %v1922_v40 }
 0x8d8   : > { %v902_v17 = vadd.f32 %v901_v10, %v900_v44  ;;  %v2006_v44 = vpop.eup %1319  ;;  %v912_v35 = vrot.slane %v911_v46, 4  ;;  %v1008_v14 = vsub.f32 1.0, %v1007_v59  ;;  %vm1042_vm12 = vweird.f32 %v1978_v52 }
 0x8d9   : > { %vm1057_vm8 = vweird.f32 %v2006_v44  ;;  %vm2154_vm11 = vmor %vm1041_vm14, %vm1042_vm12 }
 0x8da   : > { %v903_v20 = vrot.slane %v902_v17, 4  ;;  %v913_v58 = vadd.f32 %v912_v35, %v911_v46  ;;  %v878_v46 = vrot.slane %v877_v57, 2 }
 0x8dc   : > { %v904_v26 = vadd.f32 %v903_v20, %v902_v17  ;;  %v1037_v17 = vmul.f32 %v1978_v52, %v1916_v36  ;;  %v1029_v20 = vsel %vm2049_vm6, %v1929_v49, %v1025_v34  ;;  %vm2071_vm6 = vcmp.eq.f32.partialorder %v1000_v56, 8.507059e+37 }
 0x8dd   : > { %v879_v34 = vadd.f32 %v878_v46, %v877_v57 }
 0x8de   : > { %v905_v2 = vrot.slane %v904_v26, 2  ;;  %v1038_v12 = vsub.f32 1.0, %v1037_v17 }
 0x8e0   : > { %v906_v59 = vadd.f32 %v905_v2, %v904_v26  ;;  %v1039_v31 = vmul.f32 %v1978_v52, %v1038_v12 }
 0x8e2   : > { %v1040_v57 = vadd.f32 %v1978_v52, %v1039_v31 }
 0x8e4   : > { %v824_v18 = vpop.permute.xlu1 %823  ;;  %v1044_v24 = vsel %vm2154_vm11, %v1978_v52, %v1040_v57 }
 0x8e5   : > { %v867_v37 = vmul.f32 %v1330_v63, %v824_v18  ;;  %v1998_v63 = vrot.slane %v1886_v43, 7  ;;  %v969_v43 = vsel %vm2012_vm15, %v1901_v25, %v965_v60  ;;  %v896_v25 = vrot.slane %v895_v39, 2 }
 0x8e6   : > { %v1052_v60 = vmul.f32 %v2006_v44, %v1922_v40  ;;  %vm1011_vm15 = vweird.f32 %v1908_v5  ;;  %v2043_v6 = vsel %vm1989_vm13, %v1912_v32, %v969_v43  ;;  %v1009_v32 = vmul.f32 %v1966_v30, %v1008_v14 }
 0x8e7   : > { %v918_v28 = vsel %vm231_vm0, %v867_v37, 0.0  ;;  %v886_v37 = vadd.f32 %v885_v61, %v884_v41  ;;  %1321 = vrcp.f32 %v1998_v63  ;;  %v994_v61 = vmul.f32 %v1956_v3, %v993_v47  ;;  %vm2121_vm4 = vmor %vm1011_vm15, %vm1012_vm7 }
 0x8e8   : > { %v920_v7 = vadd.f32 %v919_v4, %v918_v28  ;;  %v2034_v28 = vor.u32 1.1754944e-38, %v1047_v29  ;;  %v897_v23 = vadd.f32 %v896_v25, %v895_v39  ;;  %vm2064_vm13 = vcmp.eq.f32.partialorder %v985_v27, 8.507059e+37  ;;  %vm2162_vm15 = vmor %vm1056_vm5, %vm1057_vm8 }
 0x8e9   : > { %v887_v38 = vrot.slane %v886_v37, 2  ;;  %v995_v49 = vadd.f32 %v1956_v3, %v994_v61  ;;  %v2079_v27 = vsel %vm2018_vm10, %v1924_v42, %v1029_v20  ;;  %v914_v47 = vrot.slane %v913_v58, 2 }
 0x8ea   : > { %v921_v51 = vrot.slane %v920_v7, 4  ;;  %v1062_v39 = vand.u32 2147483648, %v1922_v40  ;;  %v1010_v41 = vadd.f32 %v1966_v30, %v1009_v32  ;;  %vm2094_vm10 = vcmp.eq.f32.partialorder %v1015_v45, 8.507059e+37 }
 0x8eb   : > { %v898_v45 = vrot.slane %v897_v23, 1  ;;  %v999_v35 = vsel %vm2108_vm1, %v1956_v3, %v995_v49  ;;  %v915_v17 = vadd.f32 %v914_v47, %v913_v58  ;;  %vm2137_vm7 = vcmp.eq.f32.partialorder %v1060_v15, 8.507059e+37 }
 0x8ec   : > { %v837_v18 = vpop.permute.xlu1 %836  ;;  %v922_v4 = vadd.f32 %v921_v51, %v920_v7  ;;  %v888_v7 = vadd.f32 %v887_v38, %v886_v37  ;;  %v850_v37 = vpop.permute.xlu0 %849  ;;  %v1337_v51 = vld [vmem:[%s1553_s5 + $0x70] sm:$0xff]  ;;  %v907_v38 = vrot.slane %v906_v59, 1  ;;  %v1014_v3 = vsel %vm2121_vm4, %v1966_v30, %v1010_v41 }
 0x8ed   : > { %v869_v10 = vmul.f32 %v1336_v1, %v837_v18  ;;  %v2058_v18 = vpop.eup %1321  ;;  %v1053_v1 = vsub.f32 1.0, %v1052_v60  ;;  %v916_v16 = vrot.slane %v915_v17, 1  ;;  %v989_v15 = vsel %vm2064_vm13, %v1932_v55, %v984_v21 }
 0x8ee   : > { %v923_v29 = vrot.slane %v922_v4, 2  ;;  %v1067_v50 = vmul.f32 %v2058_v18, %v1998_v63  ;;  %v908_v20 = vadd.f32 %v907_v38, %v906_v59  ;;  %v1004_v12 = vsel %vm2071_vm6, %v1937_v8, %v999_v35 }
 0x8ef   : > { %v927_v0 = vsel %vm231_vm0, %v869_v10, 0.0  ;;  %v1054_v43 = vmul.f32 %v2006_v44, %v1053_v1  ;;  %v1063_v46 = vor.u32 1.1754944e-38, %v1062_v39  ;;  %v1019_v36 = vsel %vm2094_vm10, %v1972_v11, %v1014_v3 }
 0x8f0   : > { %v929_v53 = vadd.f32 %v928_v19, %v927_v0  ;;  %v889_v0 = vrot.slane %v888_v7, 1  ;;  %v924_v54 = vadd.f32 %v923_v29, %v922_v4  ;;  %v1068_v2 = vsub.f32 1.0, %v1067_v50 }
 0x8f1   : > { %v899_v4 = vadd.f32 %v898_v45, %v897_v23  ;;  %v1055_v58 = vadd.f32 %v2006_v44, %v1054_v43  ;;  %v1020_v59 = vmul.f32 %v1019_v36, %v908_v20  ;;  %v917_v39 = vadd.f32 %v916_v16, %v915_v17 }
 0x8f2   : > { %v930_v48 = vrot.slane %v929_v53, 4  ;;  %v890_v60 = vadd.f32 %v889_v0, %v888_v7  ;;  %v925_v7 = vrot.slane %v924_v54, 1  ;;  %v1069_v8 = vmul.f32 %v2058_v18, %v1068_v2 }
 0x8f3   : > { %v1005_v49 = vmul.f32 %v1004_v12, %v899_v4  ;;  %v1059_v40 = vsel %vm2162_vm15, %v2006_v44, %v1055_v58  ;;  %vm1071_vm5 = vweird.f32 %v1998_v63  ;;  %v1075_v11 = vand.u32 2147483647, %v1998_v63 }
 0x8f4   : > { %v931_v62 = vadd.f32 %v930_v48, %v929_v53  ;;  %v871_v53 = vmul.f32 %v1337_v51, %v850_v37  ;;  %v990_v1 = vmul.f32 %v989_v15, %v890_v60  ;;  %v926_v29 = vadd.f32 %v925_v7, %v924_v54 }
 0x8f5   : > { %v1070_v0 = vadd.f32 %v2058_v18, %v1069_v8  ;;  %vm1072_vm12 = vweird.f32 %v2058_v18  ;;  %v1091_v41 = vrot.slane %v1005_v49, 6  ;;  %v1049_v44 = vsel %vm2133_vm9, %v2034_v28, %v1044_v24 }
 0x8f6   : > { %v932_v56 = vrot.slane %v931_v62, 2  ;;  %v936_v9 = vsel %vm231_vm0, %v871_v53, 0.0  ;;  %v1089_v19 = vrot.slane %v990_v1, 7  ;;  %v1064_v42 = vsel %vm2137_vm7, %v1063_v46, %v1059_v40  ;;  %vm1073_vm13 = vmor %vm1071_vm5, %vm1072_vm12 }
 0x8f7   : > { %v1077_v31 = vand.u32 2147483648, %v1998_v63  ;;  %v1093_v21 = vrot.slane %v1020_v59, 5  ;;  %v1050_v26 = vmul.f32 %v1049_v44, %v926_v29  ;;  %v1035_v51 = vmul.f32 %v2079_v27, %v917_v39 }
 0x8f8   : > { %v933_v48 = vadd.f32 %v932_v56, %v931_v62  ;;  %v880_v62 = vrot.slane %v879_v34, 1  ;;  %v1074_v43 = vsel %vm1073_vm13, %v2058_v18, %v1070_v0  ;;  %vm2275_vm6 = vcmask 1043459  }
 0x8f9   : > { %v1078_v38 = vor.u32 1.1754944e-38, %v1077_v31  ;;  %v1097_v54 = vrot.slane %v1050_v26, 3  ;;  %vm1076_vm14 = vcmp.eq.f32.partialorder %v1075_v11, 8.507059e+37  ;;  %v1095_v63 = vrot.slane %v1035_v51, 4 }
 0x8fa   : > { %v934_v23 = vrot.slane %v933_v48, 1  ;;  %v881_v37 = vadd.f32 %v880_v62, %v879_v34  ;;  %vm2278_vm10 = vcmask 1046534   ;;  %vm2279_vm1 = vcmask 1047559  }
 0x8fb   : > { %v1079_v17 = vsel %vm1076_vm14, %v1078_v38, %v1074_v43 }
 0x8fc   : > { %v856_v14 = vpop.permute.xlu1 %855  ;;  %v935_v56 = vadd.f32 %v934_v23, %v933_v48  ;;  %v975_v50 = vmul.f32 %v2043_v6, %v881_v37 }
 0x8fd   : > { %v872_v25 = vmul.f32 %v1338_v33, %v856_v14 }
 0x8fe   : > { %v1065_v53 = vmul.f32 %v1064_v42, %v935_v56  ;;  %v1090_v28 = vsel %vm341_vm2, %v1089_v19, %v975_v50  ;;  %vm2276_vm2 = vcmask 1044484  }
 0x8ff   : > { %v937_v30 = vsel %vm231_vm0, %v872_v25, 0.0  ;;  %v1092_v35 = vsel %vm343_vm3, %v1091_v41, %v1090_v28  ;;  %vm2277_vm3 = vcmask 1045509  }
 0x900   : > { %v938_v32 = vadd.f32 %v937_v30, %v936_v9  ;;  %v1094_v6 = vsel %vm2275_vm6, %v1093_v21, %v1092_v35  ;;  %v1099_v14 = vrot.slane %v1065_v53, 2 }
 0x901   : > { %v1096_v18 = vsel %vm2276_vm2, %v1095_v63, %v1094_v6 }
 0x902   : > { %v939_v10 = vrot.slane %v938_v32, 4  ;;  %v1098_v33 = vsel %vm2277_vm3, %v1097_v54, %v1096_v18 }
 0x903   : > { %v1100_v25 = vsel %vm2278_vm10, %v1099_v14, %v1098_v33 }
 0x904   : > { %v940_v47 = vadd.f32 %v939_v10, %v938_v32 }
 0x906   : > { %v941_v52 = vrot.slane %v940_v47, 2 }
 0x908   : > { %v942_v45 = vadd.f32 %v941_v52, %v940_v47 }
 0x90a   : > { %v943_v34 = vrot.slane %v942_v45, 1 }
 0x90c   : > { %v944_v27 = vadd.f32 %v943_v34, %v942_v45 }
 0x90e   : > { %v1080_v22 = vmul.f32 %v1079_v17, %v944_v27 }
 0x910   : > { %v1101_v48 = vrot.slane %v1080_v22, 1 }
 0x912   : > { %v1102_v60 = vsel %vm2279_vm1, %v1101_v48, %v1100_v25 }
 0x913   : > { %1104 = vst.msk [vmem:[%s192_s2] sm:$0xff] %vm231_vm0, %v1102_v60 }
 0x914   : > { %1396 = shalt.err (!%p1393_p4)
}
 0x915   : > { %1209 = dma.vmem_to_hbm [thread:$0]  (%p1513_p11), %s1119_s13, 128, %s1121_s18, %s1106_s20  }
 0x916 PF: > { %s1132_s29 = sand.u32 1, %s1423_s14   ;;  %p2280_p7 = scmp.ge.s32.totalorder %s1435_s17, 2 }
 0x917   : > { %s1133_s6 = scalar_lea.sflag [#allocation5], %s1132_s29 }
 0x918   : > { %p1216_p5 = pnand %p2280_p7, %p1517_p12 }
 0x91a   : > { %p1217_p8 = pneg %p1216_p5 }
 0x91c   : > { %1418 = dma.done.wait (%p1217_p8), %s1133_s6, 128  }
 0x91d   : > { %1420 = vsyncadd (%p1217_p8), %s1133_s6, 4294967168  ;;  %p17_p10 = scmp.ge.s32.totalorder %s1488_s19, 4   ;;  %s2281_s14 = smov %s1427_s15 }
 0x91e   : > { %s2282_s15 = smov %s1431_s16  ;;  %s2283_s16 = smov %s1500_s22 }
 0x91f   : > { %s2284_s17 = smov %s1488_s19  ;;  %19 = sbr.rel (!%p17_p10) target bundleno = 7 (0x7), region = 77 }
 0x924   :  { %1139 = vsyncpa [#allocation4], 1 }
 0x925   :  { %1141 = vsyncpa [#allocation4 + $0x1], 1 }
 0x926   :  { %1142 = vsyncpa [#allocation5], 1 }
 0x927   :  { %1144 = vsyncpa [#allocation5 + $0x1], 1 }

</bundles_post_ra>
